<compile_context>
chip_gen: v7x
topology: tpu7x:2x2x1
jax: 0.10.0
libtpu: 0.0.40
codegen_flags: <defaults>
</compile_context>

<pallas_src>
import functools

import jax
import jax.numpy as jnp
from jax import lax
from jax.experimental import pallas as pl
from jax.experimental.pallas import tpu as pltpu


def _round_up(x, m):
    return ((x + m - 1) // m) * m


def _vmem_budget_bytes():
    """~85% of this generation's physical VMEM (headroom for Mosaic scratch)."""
    try:
        cap = int(pltpu.get_tpu_info().vmem_capacity_bytes)
    except Exception:
        cap = 64 << 20          # conservative fallback (v7x per-TC size)
    budget = int(cap * 0.85)
    return max(16 << 20, min(budget, 112 << 20))


def ffn_pad_dims(embed_dim, ffn_dim):
    """Padded (E_pad, F_pad) layout dims used by prepare_ffn_params/ffn_forward."""
    e_pad = _round_up(embed_dim, 256) if embed_dim > 128 else _round_up(embed_dim, 128)
    f_pad = _round_up(ffn_dim, 128)
    return e_pad, f_pad


def prepare_ffn_params(w1, b1, w2, b2, *, e_pad, f_pad, param_dtype=None):
    """One-time weight layout (do at model init, NOT per forward call).

    w1: (F, E), b1: (F,), w2: (E, F), b2: (E,)  -- PyTorch nn.Linear layout.
    Returns w1_t (E_pad, F_pad), b1_r (1, F_pad), w2_t (F_pad, E_pad),
    b2_r (1, E_pad).  Zero padding is mathematically inert for this FFN.
    """
    if param_dtype is not None:
        w1 = w1.astype(param_dtype)
        b1 = b1.astype(param_dtype)
        w2 = w2.astype(param_dtype)
        b2 = b2.astype(param_dtype)
    F, E = w1.shape
    w1_t = jnp.pad(jnp.transpose(w1), ((0, e_pad - E), (0, f_pad - F)))
    w2_t = jnp.pad(jnp.transpose(w2), ((0, f_pad - F), (0, e_pad - E)))
    b1_r = jnp.pad(b1, (0, f_pad - F)).reshape(1, f_pad)
    b2_r = jnp.pad(b2, (0, e_pad - E)).reshape(1, e_pad)
    return w1_t, b1_r, w2_t, b2_r


# ----------------------------------------------------------------------------
# Kernel A: weights fully resident in VMEM (constant index_maps), grid over
# row tiles only.  Hidden dim walked with an in-kernel loop over tf slices.
# ----------------------------------------------------------------------------
def _ffn_resident_kernel(x_ref, w1_ref, b1_ref, w2_ref, b2_ref, o_ref, acc_ref,
                         *, tf, n_f):
    # Seed the f32 accumulator with the fc2 bias (broadcast once per row tile).
    acc_ref[...] = jnp.broadcast_to(
        b2_ref[...].astype(jnp.float32), acc_ref.shape)

    def body(k, carry):
        s = pl.multiple_of(k * tf, tf)
        w1s = w1_ref[:, pl.ds(s, tf)]            # (E_pad, tf)
        b1s = b1_ref[:, pl.ds(s, tf)]            # (1, tf)
        h = jnp.dot(x_ref[...], w1s,
                    preferred_element_type=jnp.float32) + b1s
        h = jnp.maximum(h, 0.0)                  # relu activation_fn
        # TODO(synk): activation_dropout / dropout are identity (p=0 / eval).
        w2s = w2_ref[pl.ds(s, tf), :]            # (tf, E_pad)
        acc_ref[...] += jnp.dot(h.astype(w2s.dtype), w2s,
                                preferred_element_type=jnp.float32)
        return carry

    lax.fori_loop(0, n_f, body, 0, unroll=(n_f <= 2))
    o_ref[...] = acc_ref[...].astype(o_ref.dtype)


# ----------------------------------------------------------------------------
# Kernel B (fallback): weights too large for VMEM; stream (E_pad, tf)/(tf,
# E_pad) slices over an "arbitrary" k grid axis with an f32 accumulator.
# ----------------------------------------------------------------------------
def _ffn_tiled_kernel(x_ref, w1_ref, b1_ref, w2_ref, b2_ref, o_ref, acc_ref):
    k = pl.program_id(1)

    @pl.when(k == 0)
    def _():
        acc_ref[...] = jnp.broadcast_to(
            b2_ref[...].astype(jnp.float32), acc_ref.shape)

    h = jnp.dot(x_ref[...], w1_ref[...],
                preferred_element_type=jnp.float32) + b1_ref[...]
    h = jnp.maximum(h, 0.0)                      # relu activation_fn
    acc_ref[...] += jnp.dot(h.astype(w2_ref.dtype), w2_ref[...],
                            preferred_element_type=jnp.float32)

    @pl.when(k == pl.num_programs(1) - 1)
    def _():
        o_ref[...] = acc_ref[...].astype(o_ref.dtype)


def ffn_forward(x, w1_t, b1_r, w2_t, b2_r):
    """FFN forward.  x: (..., E).  Weights pre-laid-out via prepare_ffn_params."""
    orig_shape = x.shape
    E = orig_shape[-1]
    e_pad, f_pad = w1_t.shape
    assert w2_t.shape == (f_pad, e_pad)

    x2 = x.reshape(-1, E)
    M = x2.shape[0]

    x_isz = jnp.dtype(x.dtype).itemsize
    w_isz = jnp.dtype(w1_t.dtype).itemsize
    budget = _vmem_budget_bytes()

    # --- row tile: large for MXU efficiency, but keep >= 2 tiles so v7x's
    #     second TensorCore gets work under dimension_semantics=("parallel",).
    M8 = _round_up(max(M, 1), 8)
    tm_target = 1024 if budget > (80 << 20) else 512
    tm = min(tm_target, M8)
    if M8 >= 16 and M8 // tm < 2:
        tm = _round_up((M8 + 1) // 2, 8)

    # --- hidden-dim tile: largest multiple of 128 that divides F_pad, <= limit.
    def _divisor_tf(limit):
        q = f_pad // 128
        best = 1
        for d in range(1, q + 1):
            if q % d == 0 and d * 128 <= limit:
                best = d
        return best * 128

    def _resident_bytes(tm_c, tf_c):
        return (2 * tm_c * e_pad * x_isz          # x tile (double-buffered)
                + 2 * tm_c * e_pad * x_isz        # out tile (double-buffered)
                + 2 * e_pad * f_pad * w_isz       # fc1 weights (resident)
                + 2 * f_pad * e_pad * w_isz       # fc2 weights (resident)
                + 2 * (f_pad + e_pad) * w_isz     # biases
                + tm_c * e_pad * 4                # f32 accumulator scratch
                + 2 * tm_c * tf_c * 4)            # live hidden chunk + slack

    def _tiled_bytes(tm_c, tf_c):
        return (2 * tm_c * e_pad * x_isz
                + 2 * tm_c * e_pad * x_isz
                + 2 * e_pad * tf_c * w_isz
                + 2 * tf_c * e_pad * w_isz
                + 2 * (tf_c + e_pad) * w_isz
                + tm_c * e_pad * 4
                + 2 * tm_c * tf_c * 4)

    def _fits(nbytes):
        return int(nbytes * 1.2) + (2 << 20) <= budget

    tm_cands = sorted({t for t in (tm, 512, 256, 128, 64, 32, 16, 8) if t <= tm},
                      reverse=True)

    plan = None  # (mode, tm, tf)
    for tm_c in tm_cands:                         # prefer resident weights
        tf_c = _divisor_tf(2048)
        if _fits(_resident_bytes(tm_c, tf_c)):
            plan = ("resident", tm_c, tf_c)
            break
    if plan is None:                              # fall back to streamed slices
        for tm_c in tm_cands:
            for tf_limit in (2048, 1024, 512, 256, 128):
                tf_c = _divisor_tf(tf_limit)
                if _fits(_tiled_bytes(tm_c, tf_c)):
                    plan = ("tiled", tm_c, tf_c)
                    break
            if plan is not None:
                break
    if plan is None:
        plan = ("tiled", 8, 128)                  # last resort: tiny tiles

    mode, tm, tf = plan
    M_pad = _round_up(M, tm)

    need_pad = (M_pad != M) or (e_pad != E)
    if need_pad:
        x2 = jnp.pad(x2, ((0, M_pad - M), (0, e_pad - E)))

    vmem_limit = int(budget)

    if mode == "resident":
        n_f = f_pad // tf
        kernel = functools.partial(_ffn_resident_kernel, tf=tf, n_f=n_f)
        out = pl.pallas_call(
            kernel,
            out_shape=jax.ShapeDtypeStruct((M_pad, e_pad), x.dtype),
            grid=(M_pad // tm,),
            in_specs=[
                pl.BlockSpec((tm, e_pad), lambda m: (m, 0)),      # x rows
                pl.BlockSpec((e_pad, f_pad), lambda m: (0, 0)),   # fc1 W (resident)
                pl.BlockSpec((1, f_pad), lambda m: (0, 0)),       # fc1 b
                pl.BlockSpec((f_pad, e_pad), lambda m: (0, 0)),   # fc2 W (resident)
                pl.BlockSpec((1, e_pad), lambda m: (0, 0)),       # fc2 b
            ],
            out_specs=pl.BlockSpec((tm, e_pad), lambda m: (m, 0)),
            scratch_shapes=[pltpu.VMEM((tm, e_pad), jnp.float32)],
            compiler_params=pltpu.CompilerParams(
                dimension_semantics=("parallel",),
                vmem_limit_bytes=vmem_limit),
        )(x2, w1_t, b1_r, w2_t, b2_r)
    else:
        out = pl.pallas_call(
            _ffn_tiled_kernel,
            out_shape=jax.ShapeDtypeStruct((M_pad, e_pad), x.dtype),
            grid=(M_pad // tm, f_pad // tf),
            in_specs=[
                pl.BlockSpec((tm, e_pad), lambda m, k: (m, 0)),   # x rows
                pl.BlockSpec((e_pad, tf), lambda m, k: (0, k)),   # fc1 W slice
                pl.BlockSpec((1, tf), lambda m, k: (0, k)),       # fc1 b slice
                pl.BlockSpec((tf, e_pad), lambda m, k: (k, 0)),   # fc2 W slice
                pl.BlockSpec((1, e_pad), lambda m, k: (0, 0)),    # fc2 b
            ],
            out_specs=pl.BlockSpec((tm, e_pad), lambda m, k: (m, 0)),
            scratch_shapes=[pltpu.VMEM((tm, e_pad), jnp.float32)],
            compiler_params=pltpu.CompilerParams(
                dimension_semantics=("parallel", "arbitrary"),
                vmem_limit_bytes=vmem_limit),
        )(x2, w1_t, b1_r, w2_t, b2_r)

    if need_pad:
        out = out[:M, :E]
    return out.reshape(orig_shape)


def _init_linear(key, out_dim, in_dim, dtype=jnp.float32):
    """Deterministic nn.Linear-style init: U(-1/sqrt(fan_in), 1/sqrt(fan_in))."""
    kw, kb = jax.random.split(key)
    bound = 1.0 / jnp.sqrt(in_dim)
    w = jax.random.uniform(kw, (out_dim, in_dim), dtype, -bound, bound)
    b = jax.random.uniform(kb, (out_dim,), dtype, -bound, bound)
    return w, b


if __name__ == "__main__":
    # Small shapes: seq=8, batch=2, embed_dim=32, ffn_dim=64  (fairseq T, B, C)
    T, B, E, F = 8, 2, 32, 64

    key = jax.random.PRNGKey(0)
    kx, k1, k2 = jax.random.split(key, 3)

    x = jax.random.normal(kx, (T, B, E), jnp.float32)
    w1, b1 = _init_linear(k1, F, E)   # fc1: embed -> ffn
    w2, b2 = _init_linear(k2, E, F)   # fc2: ffn -> embed

    e_pad, f_pad = ffn_pad_dims(E, F)

    # ---- f32 path -----------------------------------------------------------
    params = prepare_ffn_params(w1, b1, w2, b2, e_pad=e_pad, f_pad=f_pad)
    y = ffn_forward(x, *params)
    y = jax.block_until_ready(y)

    # Pure-JAX reference.  Tolerance is loose-ish because TPU default matmul
    # precision for f32 (reference and/or MXU lowering) may use bf16 passes;
    # wiring errors would show up as O(1) differences, not O(1e-2).
    x_flat = x.reshape(-1, E)
    h_ref = jnp.maximum(x_flat @ w1.T + b1, 0.0)
    y_ref = (h_ref @ w2.T + b2).reshape(x.shape)
    assert y.shape == x.shape
    assert jnp.allclose(y, y_ref, atol=2e-2, rtol=2e-2), "f32 mismatch vs reference"

    # ---- bf16 mixed-precision path (MXU-native dots, f32 accumulation) ------
    params_bf16 = prepare_ffn_params(w1, b1, w2, b2, e_pad=e_pad, f_pad=f_pad,
                                     param_dtype=jnp.bfloat16)
    y_bf16 = ffn_forward(x.astype(jnp.bfloat16), *params_bf16)
    y_bf16 = jax.block_until_ready(y_bf16)
    assert jnp.allclose(y_bf16.astype(jnp.float32), y_ref, atol=1e-1, rtol=1e-1), \
        "bf16 mismatch vs reference"

    print("KERNEL_OK")
</pallas_src>

<mosaic_0001>
module attributes {stable_mosaic.version = 11 : i64} {
  func.func @_ffn_resident_kernel(%arg0: i32, %arg1: memref<8x128xf32, #tpu.memory_space<vmem>>, %arg2: memref<128x128xf32, #tpu.memory_space<vmem>>, %arg3: memref<1x128xf32, #tpu.memory_space<vmem>>, %arg4: memref<128x128xf32, #tpu.memory_space<vmem>>, %arg5: memref<1x128xf32, #tpu.memory_space<vmem>>, %arg6: memref<8x128xf32, #tpu.memory_space<vmem>>, %arg7: memref<8x128xf32, #tpu.memory_space<vmem>>) attributes {dimension_semantics = [#tpu.dimension_semantics<parallel>], iteration_bounds = array<i64: 2>, scalar_prefetch = 0 : i64, scratch_operands = 1 : i64, tpu.core_type = #tpu.core_type<tc>, window_params = [{transform_indices = @transform_0, window_bounds = array<i64: 8, 128>}, {pipeline_mode = #tpu.pipeline_mode<synchronous>, transform_indices = @transform_1, window_bounds = array<i64: 128, 128>}, {pipeline_mode = #tpu.pipeline_mode<synchronous>, transform_indices = @transform_2, window_bounds = array<i64: 1, 128>}, {pipeline_mode = #tpu.pipeline_mode<synchronous>, transform_indices = @transform_3, window_bounds = array<i64: 128, 128>}, {pipeline_mode = #tpu.pipeline_mode<synchronous>, transform_indices = @transform_4, window_bounds = array<i64: 1, 128>}, {transform_indices = @transform_5, window_bounds = array<i64: 8, 128>}]} {
    %c0 = arith.constant 0 : index
    %c0_0 = arith.constant 0 : index
    %0 = vector.load %arg5[%c0, %c0_0] : memref<1x128xf32, #tpu.memory_space<vmem>>, vector<1x128xf32>
    %1 = vector.shape_cast %0 : vector<1x128xf32> to vector<1x128xf32>
    %2 = vector.broadcast %1 : vector<1x128xf32> to vector<8x128xf32>
    %c0_1 = arith.constant 0 : index
    %c0_2 = arith.constant 0 : index
    %3 = vector.load %arg7[%c0_1, %c0_2] : memref<8x128xf32, #tpu.memory_space<vmem>>, vector<8x128xf32>
    tpu.vector_store %arg7[%c0_1, %c0_2], %2 {strides = array<i32>} : memref<8x128xf32, #tpu.memory_space<vmem>>, vector<8x128xf32>,
    %c0_i32 = arith.constant 0 : i32
    %c128_i32 = arith.constant 128 : i32
    %4 = arith.muli %c0_i32, %c128_i32 : i32
    %5 = tpu.assume_multiple %4, 128 : i32
    %c0_3 = arith.constant 0 : index
    %6 = arith.index_cast %5 : i32 to index
    %7 = vector.load %arg2[%c0_3, %6] : memref<128x128xf32, #tpu.memory_space<vmem>>, vector<128x128xf32>
    %c0_4 = arith.constant 0 : index
    %8 = arith.index_cast %5 : i32 to index
    %9 = vector.load %arg3[%c0_4, %8] : memref<1x128xf32, #tpu.memory_space<vmem>>, vector<1x128xf32>
    %c0_5 = arith.constant 0 : index
    %c0_6 = arith.constant 0 : index
    %10 = vector.load %arg1[%c0_5, %c0_6] : memref<8x128xf32, #tpu.memory_space<vmem>>, vector<8x128xf32>
    %cst = arith.constant dense<0.000000e+00> : vector<8x128xf32>
    %11 = tpu.matmul %10, %7, %cst {dimension_numbers = #tpu.dot_dimension_numbers<[1], [0], [0], [1], [0, 0, 1, 1], [], []>} : vector<8x128xf32>, vector<128x128xf32>, vector<8x128xf32> -> vector<8x128xf32>
    %12 = vector.broadcast %9 : vector<1x128xf32> to vector<8x128xf32>
    %13 = arith.addf %11, %12 : vector<8x128xf32>
    %cst_7 = arith.constant 0.000000e+00 : f32
    %14 = vector.broadcast %cst_7 : f32 to vector<8x128xf32>
    %15 = arith.maximumf %13, %14 : vector<8x128xf32>
    %16 = arith.index_cast %5 : i32 to index
    %c0_8 = arith.constant 0 : index
    %17 = vector.load %arg4[%16, %c0_8] : memref<128x128xf32, #tpu.memory_space<vmem>>, vector<128x128xf32>
    %c0_9 = arith.constant 0 : index
    %c0_10 = arith.constant 0 : index
    %18 = vector.load %arg7[%c0_9, %c0_10] : memref<8x128xf32, #tpu.memory_space<vmem>>, vector<8x128xf32>
    %cst_11 = arith.constant dense<0.000000e+00> : vector<8x128xf32>
    %19 = tpu.matmul %15, %17, %cst_11 {dimension_numbers = #tpu.dot_dimension_numbers<[1], [0], [0], [1], [0, 0, 1, 1], [], []>} : vector<8x128xf32>, vector<128x128xf32>, vector<8x128xf32> -> vector<8x128xf32>
    %20 = arith.addf %18, %19 : vector<8x128xf32>
    %c0_12 = arith.constant 0 : index
    %c0_13 = arith.constant 0 : index
    %21 = vector.load %arg7[%c0_12, %c0_13] : memref<8x128xf32, #tpu.memory_space<vmem>>, vector<8x128xf32>
    tpu.vector_store %arg7[%c0_12, %c0_13], %20 {strides = array<i32>} : memref<8x128xf32, #tpu.memory_space<vmem>>, vector<8x128xf32>,
    %c1_i32 = arith.constant 1 : i32
    %c0_14 = arith.constant 0 : index
    %c0_15 = arith.constant 0 : index
    %22 = vector.load %arg7[%c0_14, %c0_15] : memref<8x128xf32, #tpu.memory_space<vmem>>, vector<8x128xf32>
    %c0_16 = arith.constant 0 : index
    %c0_17 = arith.constant 0 : index
    %23 = vector.load %arg6[%c0_16, %c0_17] : memref<8x128xf32, #tpu.memory_space<vmem>>, vector<8x128xf32>
    tpu.vector_store %arg6[%c0_16, %c0_17], %22 {strides = array<i32>} : memref<8x128xf32, #tpu.memory_space<vmem>>, vector<8x128xf32>,
    return
  }
  func.func @transform_0(%arg0: i32) -> (i32, i32) {
    %c0_i32 = arith.constant 0 : i32
    %c0_i32_0 = arith.constant 0 : i32
    return %arg0, %c0_i32 : i32, i32
  }
  func.func @transform_1(%arg0: i32) -> (i32, i32) {
    %c0_i32 = arith.constant 0 : i32
    %c0_i32_0 = arith.constant 0 : i32
    %c0_i32_1 = arith.constant 0 : i32
    return %c0_i32, %c0_i32_0 : i32, i32
  }
  func.func @transform_2(%arg0: i32) -> (i32, i32) {
    %c0_i32 = arith.constant 0 : i32
    %c0_i32_0 = arith.constant 0 : i32
    %c0_i32_1 = arith.constant 0 : i32
    return %c0_i32, %c0_i32_0 : i32, i32
  }
  func.func @transform_3(%arg0: i32) -> (i32, i32) {
    %c0_i32 = arith.constant 0 : i32
    %c0_i32_0 = arith.constant 0 : i32
    %c0_i32_1 = arith.constant 0 : i32
    return %c0_i32, %c0_i32_0 : i32, i32
  }
  func.func @transform_4(%arg0: i32) -> (i32, i32) {
    %c0_i32 = arith.constant 0 : i32
    %c0_i32_0 = arith.constant 0 : i32
    %c0_i32_1 = arith.constant 0 : i32
    return %c0_i32, %c0_i32_0 : i32, i32
  }
  func.func @transform_5(%arg0: i32) -> (i32, i32) {
    %c0_i32 = arith.constant 0 : i32
    %c0_i32_0 = arith.constant 0 : i32
    return %arg0, %c0_i32 : i32, i32
  }
}

</mosaic_0001>

<bundles_post_ra>
// kernel: tpu_custom_call.1
= control target key start
LH: loop header
LB: loop body
LE: loop exit
PB: predicated region body
PF: predicated region fallthrough
CT: control target
= control target key end

     0   :  { %10 = vsyncpa [#allocation4], 0  ;;  %s1263_s0 = inlined_call_operand.hbm [shape: f32[16,128], index: 0, kind: input, shape index: {}]   ;;  %s1264_s1 = inlined_call_operand.hbm [shape: f32[128,128], index: 1, kind: input, shape index: {}]   ;;  %s1265_s2 = inlined_call_operand.vmem [shape: f32[1,128], index: 2, kind: input, shape index: {}]   ;;  %s1266_s3 = inlined_call_operand.hbm [shape: f32[128,128], index: 3, kind: input, shape index: {}]   ;;  %s1267_s4 = inlined_call_operand.vmem [shape: f32[1,128], index: 4, kind: input, shape index: {}]   ;;  %s1268_s5 = inlined_call_operand.hbm [shape: f32[16,128], index: 5, kind: output, shape index: {}]  }
   0x1   :  { %12 = vsyncpa [#allocation4 + $0x1], 0 }
   0x2   :  { %13 = vsyncpa [#allocation7], 0 }
   0x3   :  { %14 = vsyncpa [#allocation5], 0 }
   0x4   :  { %16 = vsyncpa [#allocation5 + $0x1], 0  ;;  %s1005_s18 = smov 0   ;;  %s1007_s19 = smov 0  }
   0x5   :  { %s1009_s20 = smov 0   ;;  %s1011_s21 = smov 0  }
   0x6 LB: > { %s1026_s22 = sadd.s32 4294967295, %s964_s21   ;;  %s566_s23 = sadd.s32 4294967294, %s964_s21   ;;  %s964_s21 = sphi %s1011_s21, %s1288_s21   ;;  %s960_s20 = sphi %s1009_s20, %s1287_s20   ;;  %s956_s19 = sphi %s1007_s19, %s1286_s19   ;;  %s952_s18 = sphi %s1005_s18, %s1285_s18  }
   0x7   : > { %p42_p0 = scmp.ne.s32.totalorder %s956_s19, %s952_s18  ;;  %p1269_p1 = scmp.eq.s32.totalorder %s1026_s22, 0 }
   0x8   : > { %p156_p3 = scmp.eq.s32.totalorder %s566_s23, 1  ;;  %p567_p5 = scmp.ge.s32.totalorder %s964_s21, 1 }
   0x9   : > { %p1035_p4 = por %p1269_p1, %p42_p0  ;;  %p163_p7 = scmp.lt.s32.totalorder %s964_s21, 3 }
   0xa   : > { %p1040_p6 = por %p156_p3, %p42_p0  ;;  %s966_s27 = smov [#allocation6]  }
   0xb   : > { %s1272_s24 = scalar_select %p1035_p4, 1, 0 }
   0xc   : > { %s1273_s25 = scalar_select %p1040_p6, 1, 0 }
   0xd   : > { %p1045_p8 = pnand %p567_p5, %p163_p7  ;;  %s175_s28 = sshll.u32 %s966_s27, 4  ;;  %s1049_s28 = int_to_ptr.vmem [resolvable:$true] %s175_s28 }
   0xe   : > { %s967_s30 = smov [#allocation8]   ;;  %s808_s9 = scalar_lea.hbm %s1264_s1, 2048 }
   0xf   : > { %p748_p9 = pneg %p1045_p8  ;;  %s191_s6 = sshll.u32 %s967_s30, 4  ;;  %s1060_s6 = int_to_ptr.vmem [resolvable:$true] %s191_s6 }
  0x10   : > { %p809_p12 = scmp.ne.s32.totalorder %s1264_s1, %s808_s9  ;;  %p815_p5 = scmp.lt.u32.totalorder %s808_s9, %s1264_s1 }
  0x11   : > { %p1056_p11 = pnand %p748_p9, %p1269_p1 }
  0x13   : > { %p810_p13 = pneg %p1056_p11 }
  0x15   : > { %p811_p0 = pnand %p810_p13, %p809_p12 }
  0x17   : > { %p812_p3 = pneg %p811_p0 }
  0x19   : > { %p817_p7 = pnand %p815_p5, %p812_p3 }
  0x1b   : > { %820 = shalt.err (!%p817_p7)
}
  0x1c   : > { %s821_s14 = scalar_lea.vmem %s1049_s28, 2048  ;;  %p829_p2 = scmp.lt.s32.totalorder %s1049_s28, %s1049_s28 }
  0x1d   : > { %p822_p9 = scmp.ne.s32.totalorder %s1049_s28, %s821_s14  ;;  %p830_p12 = scmp.lt.s32.totalorder %s821_s14, %s821_s14 }
  0x1f   : > { %p824_p10 = pnand %p822_p9, %p810_p13  ;;  %p831_p0 = por %p830_p12, %p829_p2 }
  0x21   : > { %p825_p1 = pneg %p824_p10 }
  0x23   : > { %p832_p6 = pnand %p831_p0, %p825_p1 }
  0x25   : > { %835 = shalt.err (!%p832_p6)
}
  0x26   : > { %s968_s15 = smov 128   ;;  %s969_s16 = smov 8  }
  0x27   : > { %751 = dma.hbm_to_vmem [thread:$0]  (!%p1056_p11), %s1264_s1, 2048, %s1049_s28, [#allocation7], %s968_s15, %s968_s15, %s969_s16  }
  0x28   : > { %s836_s7 = scalar_lea.hbm %s1266_s3, 2048 }
  0x29   : > { %p837_p2 = scmp.ne.s32.totalorder %s1266_s3, %s836_s7  ;;  %p843_p10 = scmp.lt.u32.totalorder %s836_s7, %s1266_s3 }
  0x2b   : > { %p839_p1 = pnand %p837_p2, %p810_p13 }
  0x2d   : > { %p840_p6 = pneg %p839_p1 }
  0x2f   : > { %p845_p3 = pnand %p843_p10, %p840_p6 }
  0x31   : > { %848 = shalt.err (!%p845_p3)
}
  0x32   : > { %s849_s28 = scalar_lea.vmem %s1060_s6, 2048  ;;  %p857_p12 = scmp.lt.s32.totalorder %s1060_s6, %s1060_s6 }
  0x33   : > { %p850_p5 = scmp.ne.s32.totalorder %s1060_s6, %s849_s28  ;;  %p858_p0 = scmp.lt.s32.totalorder %s849_s28, %s849_s28 }
  0x35   : > { %p852_p7 = pnand %p850_p5, %p810_p13  ;;  %p859_p2 = por %p858_p0, %p857_p12 }
  0x37   : > { %p853_p9 = pneg %p852_p7 }
  0x39   : > { %p860_p1 = pnand %p859_p2, %p853_p9 }
  0x3b   : > { %863 = shalt.err (!%p860_p1)
}
  0x3c   : > { %754 = dma.hbm_to_vmem [thread:$0]  (!%p1056_p11), %s1266_s3, 2048, %s1060_s6, [#allocation7], %s968_s15, %s968_s15, %s969_s16  }
  0x3d   : > { %s1115_s14 = sadd.s32 1, %s964_s21   ;;  %s29_s29 = sadd.s32 1, %s960_s20 }
  0x3e   : > { %s26_s17 = ssub.s32 %s964_s21, %s1115_s14  ;;  %p36_p13 = scmp.ne.s32.totalorder %s960_s20, %s956_s19 }
  0x3f   : > { %p27_p6 = scmp.eq.s32.totalorder %s26_s17, 0  ;;  %p37_p10 = scmp.eq.s32.totalorder %s964_s21, 0 }
  0x40   : > { %p1276_p3 = scmp.eq.s32.totalorder %s1026_s22, 1  ;;  %p765_p7 = scmp.lt.s32.totalorder %s964_s21, 2 }
  0x41   : > { %s1131_s27 = scalar_select %p27_p6, %s960_s20, %s29_s29  }
  0x42   : > { %p1125_p5 = por %p1276_p3, %p36_p13  ;;  %p38_p9 = por %p37_p10, %p36_p13 }
  0x43   : > { %s208_s30 = sand.u32 1, %s960_s20   ;;  %s572_s6 = sshll.u32 %s964_s21, 7 }
  0x44   : > { %s1277_s23 = scalar_select %p1125_p5, 1, 0 }
  0x45   : > { %s571_s7 = sshll.u32 %s208_s30, 3  ;;  %s1138_s8 = scalar_lea.hbm %s1263_s0, %s572_s6 }
  0x46   : > { %s212_s9 = scalar_lea.vmem [#allocation3], %s571_s7  ;;  %p1142_p11 = pnand %p765_p7, %p38_p9 }
  0x47   : > { %s219_s10 = sshll.u32 %s212_s9, 4  ;;  %s209_s28 = scalar_lea.sflag [#allocation4], %s208_s30  ;;  %s1140_s10 = int_to_ptr.vmem [resolvable:$true] %s219_s10 }
  0x48   : > { %s864_s12 = scalar_lea.hbm %s1138_s8, 128  ;;  %p866_p0 = pneg %p1142_p11 }
  0x49   : > { %p865_p12 = scmp.ne.s32.totalorder %s1138_s8, %s864_s12  ;;  %s869_s17 = scalar_lea.hbm %s1263_s0, 256 }
  0x4a   : > { %p870_p13 = scmp.lt.u32.totalorder %s1138_s8, %s1263_s0  ;;  %p871_p6 = scmp.lt.u32.totalorder %s869_s17, %s864_s12 }
  0x4b   : > { %p867_p2 = pnand %p866_p0, %p865_p12  ;;  %p873_p3 = scmp.lt.u32.totalorder %s864_s12, %s1138_s8 }
  0x4c   : > { %p872_p10 = por %p871_p6, %p870_p13 }
  0x4d   : > { %p868_p1 = pneg %p867_p2 }
  0x4e   : > { %p874_p7 = por %p873_p3, %p872_p10 }
  0x50   : > { %p875_p9 = pnand %p874_p7, %p868_p1 }
  0x52   : > { %878 = shalt.err (!%p875_p9)
}
  0x53   : > { %s879_s30 = scalar_lea.vmem %s1140_s10, 128  ;;  %s970_s15 = smov [#allocation3]  }
  0x54   : > { %p880_p12 = scmp.ne.s32.totalorder %s1140_s10, %s879_s30  ;;  %s884_s16 = sshll.u32 %s970_s15, 4  ;;  %s885_s16 = int_to_ptr.vmem [resolvable:$false] %s884_s16 }
  0x55   : > { %s886_s9 = scalar_lea.vmem %s885_s16, 256  ;;  %p887_p4 = scmp.lt.s32.totalorder %s1140_s10, %s885_s16 }
  0x56   : > { %p882_p2 = pnand %p880_p12, %p866_p0  ;;  %p888_p13 = scmp.lt.s32.totalorder %s886_s9, %s879_s30 }
  0x58   : > { %p883_p5 = pneg %p882_p2  ;;  %p889_p6 = por %p888_p13, %p887_p4 }
  0x5a   : > { %p890_p10 = pnand %p889_p6, %p883_p5 }
  0x5c   : > { %893 = shalt.err (!%p890_p10)
}
  0x5d   : > { %758 = dma.hbm_to_vmem [thread:$0]  (!%p1142_p11), %s1138_s8, 128, %s1140_s10, %s209_s28  }
  0x5e   : > { %228 = sbr.rel (%p1045_p8) target bundleno = 583 (0x247), region = 40  ;;  %s1174_s12 = sand.u32 (!%p1045_p8), 1, %s956_s19  }
  0x5f   : > { %s574_s13 = sshll.u32 (!%p1045_p8), %s1174_s12, 3  ;;  %s231_s29 = scalar_lea.sflag (!%p1045_p8), [#allocation4], %s1174_s12 }
  0x60   : > { %s1180_s17 = scalar_lea.vmem (!%p1045_p8), [#allocation3], %s574_s13  ;;  %p1279_p4 = scmp.ne.s32.totalorder (!%p1045_p8), %s1272_s24, 0 }
  0x65   : > { %939 = dma.done.wait (%p1279_p4), %s231_s29, 128  }
  0x66   : > { %941 = vsyncadd (%p1279_p4), %s231_s29, 4294967168  ;;  %p1280_p5 = scmp.eq.s32.totalorder %s1026_s22, 0 }
  0x68   : > { %943 = dma.done.wait (%p1280_p5), [#allocation7], 4096   ;;  %p1281_p8 = pmov %p1280_p5 }
  0x69   : > { %v971_v0 = vmov 0.0|0.0   ;;  %vm972_vm0 = vmmov 0   ;;  %v973_v1 = vmov 0.0   ;;  %v277_v2 = vld [vmem:[#allocation6] sm:$0xff]  ;;  %v278_v3 = vld [vmem:[#allocation6 + $0x8] sm:$0xff]  ;;  %v279_v4 = vld [vmem:[#allocation6 + $0x10] sm:$0xff] }
  0x6a   : > { %945 = vsyncadd (%p1281_p8), [#allocation7], 4294963200  ;;  %688 = vmatprep.subr.bf16.mxu0 %v971_v0  ;;  %650 = vmatprep.mubr.msk.f32.mxu0 %vm972_vm0, %v973_v1  ;;  %v689_v5 = vpack.c.bf16 %v278_v3, %v277_v2  ;;  %v280_v6 = vld [vmem:[#allocation6 + $0x18] sm:$0xff]  ;;  %v281_v8 = vld [vmem:[#allocation6 + $0x20] sm:$0xff]  ;;  %s581_s11 = sshll.u32 %s1026_s22, 7  ;;  %s268_s28 = scalar_lea.vmem [#allocation9], %s574_s13 }
  0x6b   : > { %712 = vmatprep.subr.bf16.mxu1 %v971_v0  ;;  %685 = vmatprep.mubr.msk.f32.mxu1 %vm972_vm0, %v973_v1  ;;  %v692_v7 = vpack.c.bf16 %v280_v6, %v279_v4  ;;  %v282_v9 = vld [vmem:[#allocation6 + $0x28] sm:$0xff]  ;;  %v372_v10 = vld [vmem:[#allocation8] sm:$0xff]  ;;  %v374_v12 = vld [vmem:[#allocation8 + $0x10] sm:$0xff]  ;;  %s477_s7 = sshll.u32 %s268_s28, 4  ;;  %s1219_s15 = scalar_lea.hbm %s1268_s5, %s581_s11  ;;  %s1221_s7 = int_to_ptr.vmem [resolvable:$true] %s477_s7 }
  0x6c   : > { %690 = vmatpush3.bf16.msra.mxu0 %v689_v5  ;;  %v373_v11 = vld [vmem:[#allocation8 + $0x8] sm:$0xff]  ;;  %v375_v13 = vld [vmem:[#allocation8 + $0x18] sm:$0xff]  ;;  %v695_v14 = vpack.c.bf16 %v282_v9, %v281_v8  ;;  %v283_v16 = vld [vmem:[#allocation6 + $0x30] sm:$0xff]  ;;  %s464_s16 = scalar_lea.sflag [#allocation5], %s1174_s12  ;;  %s894_s9 = scalar_lea.vmem %s1221_s7, 128 }
  0x6d   : > { %691 = vmatprep.subr.bf16.mxu0 %v971_v0  ;;  %v713_v15 = vpack.c.bf16 %v373_v11, %v372_v10  ;;  %v284_v17 = vld [vmem:[#allocation6 + $0x38] sm:$0xff]  ;;  %v716_v18 = vpack.c.bf16 %v375_v13, %v374_v12  ;;  %v376_v19 = vld [vmem:[#allocation8 + $0x20] sm:$0xff]  ;;  %v377_v20 = vld [vmem:[#allocation8 + $0x28] sm:$0xff]  ;;  %p895_p11 = scmp.ne.s32.totalorder %s1221_s7, %s894_s9  ;;  %p1282_p0 = scmp.ne.s32.totalorder %s1277_s23, 0 }
  0x6e   : > { %v698_v21 = vpack.c.bf16 %v284_v17, %v283_v16  ;;  %v285_v22 = vld [vmem:[#allocation6 + $0x40] sm:$0xff]  ;;  %v286_v23 = vld [vmem:[#allocation6 + $0x48] sm:$0xff]  ;;  %v719_v24 = vpack.c.bf16 %v377_v20, %v376_v19  ;;  %v378_v25 = vld [vmem:[#allocation8 + $0x30] sm:$0xff]  ;;  %s974_s22 = smov [#allocation9]  }
  0x6f   : > { %714 = vmatpush3.bf16.msra.mxu1 %v713_v15  ;;  %v379_v26 = vld [vmem:[#allocation8 + $0x38] sm:$0xff]  ;;  %v701_v27 = vpack.c.bf16 %v286_v23, %v285_v22  ;;  %v287_v28 = vld [vmem:[#allocation6 + $0x50] sm:$0xff]  ;;  %v380_v31 = vld [vmem:[#allocation8 + $0x40] sm:$0xff]  ;;  %p896_p1 = pnand %p895_p11, %p1282_p0  ;;  %s898_s13 = sshll.u32 %s974_s22, 4  ;;  %s899_s13 = int_to_ptr.vmem [resolvable:$false] %s898_s13 }
  0x70   : > { %693 = vmatpush3.bf16.msra.mxu0 %v692_v7  ;;  %715 = vmatprep.subr.bf16.mxu1 %v971_v0  ;;  %v288_v29 = vld [vmem:[#allocation6 + $0x58] sm:$0xff]  ;;  %v722_v30 = vpack.c.bf16 %v379_v26, %v378_v25  ;;  %v381_v32 = vld [vmem:[#allocation8 + $0x48] sm:$0xff]  ;;  %v289_v34 = vld [vmem:[#allocation6 + $0x60] sm:$0xff]  ;;  %s900_s29 = scalar_lea.vmem %s899_s13, 256  ;;  %p901_p7 = scmp.lt.s32.totalorder %s1221_s7, %s899_s13 }
  0x71   : > { %694 = vmatprep.subr.bf16.mxu0 %v971_v0  ;;  %v704_v33 = vpack.c.bf16 %v288_v29, %v287_v28  ;;  %v290_v35 = vld [vmem:[#allocation6 + $0x68] sm:$0xff]  ;;  %v725_v36 = vpack.c.bf16 %v381_v32, %v380_v31  ;;  %v382_v37 = vld [vmem:[#allocation8 + $0x50] sm:$0xff]  ;;  %v383_v38 = vld [vmem:[#allocation8 + $0x58] sm:$0xff]  ;;  %p897_p3 = pneg %p896_p1  ;;  %p902_p9 = scmp.lt.s32.totalorder %s900_s29, %s894_s9 }
  0x72   : > { %v707_v39 = vpack.c.bf16 %v290_v35, %v289_v34  ;;  %v291_v40 = vld [vmem:[#allocation6 + $0x70] sm:$0xff]  ;;  %v292_v41 = vld [vmem:[#allocation6 + $0x78] sm:$0xff]  ;;  %v728_v42 = vpack.c.bf16 %v383_v38, %v382_v37  ;;  %v384_v43 = vld [vmem:[#allocation8 + $0x60] sm:$0xff] }
  0x73   : > { %717 = vmatpush3.bf16.msra.mxu1 %v716_v18  ;;  %v385_v44 = vld [vmem:[#allocation8 + $0x68] sm:$0xff]  ;;  %v710_v45 = vpack.c.bf16 %v292_v41, %v291_v40  ;;  %v294_v47 = vld [vmem:[%s1180_s17] sm:$0xff]  ;;  %p903_p12 = por %p902_p9, %p901_p7 }
  0x74   : > { %696 = vmatpush3.bf16.msra.mxu0 %v695_v14  ;;  %718 = vmatprep.subr.bf16.mxu1 %v971_v0  ;;  %v731_v46 = vpack.c.bf16 %v385_v44, %v384_v43  ;;  %v386_v48 = vld [vmem:[#allocation8 + $0x70] sm:$0xff]  ;;  %v387_v49 = vld [vmem:[#allocation8 + $0x78] sm:$0xff] }
  0x75   : > { %697 = vmatprep.subr.bf16.mxu0 %v971_v0  ;;  %v734_v50 = vpack.c.bf16 %v387_v49, %v386_v48  ;;  %v579_v51 = vld [vmem:[%s1265_s2] ss:$0 sm:$0xff]  ;;  %p904_p2 = pnand %p903_p12, %p897_p3 }
  0x76   : > { %v578_v56 = vld [vmem:[%s1267_s4] ss:$0 sm:$0xff] }
  0x77   : > { %720 = vmatpush3.bf16.msra.mxu1 %v719_v24 }
  0x78   : > { %699 = vmatpush3.bf16.msra.mxu0 %v698_v21  ;;  %721 = vmatprep.subr.bf16.mxu1 %v971_v0 }
  0x79   : > { %700 = vmatprep.subr.bf16.mxu0 %v971_v0 }
  0x7b   : > { %723 = vmatpush3.bf16.msra.mxu1 %v722_v30 }
  0x7c   : > { %702 = vmatpush3.bf16.msra.mxu0 %v701_v27  ;;  %724 = vmatprep.subr.bf16.mxu1 %v971_v0 }
  0x7d   : > { %703 = vmatprep.subr.bf16.mxu0 %v971_v0 }
  0x7f   : > { %726 = vmatpush3.bf16.msra.mxu1 %v725_v36 }
  0x80   : > { %705 = vmatpush3.bf16.msra.mxu0 %v704_v33  ;;  %727 = vmatprep.subr.bf16.mxu1 %v971_v0 }
  0x81   : > { %706 = vmatprep.subr.bf16.mxu0 %v971_v0 }
  0x83   : > { %729 = vmatpush3.bf16.msra.mxu1 %v728_v42 }
  0x84   : > { %708 = vmatpush3.bf16.msra.mxu0 %v707_v39  ;;  %730 = vmatprep.subr.bf16.mxu1 %v971_v0 }
  0x85   : > { %709 = vmatprep.subr.bf16.mxu0 %v971_v0 }
  0x87   : > { %732 = vmatpush3.bf16.msra.mxu1 %v731_v46 }
  0x88   : > { %711 = vmatpush3.bf16.msra.mxu0 %v710_v45  ;;  %733 = vmatprep.subr.bf16.mxu1 %v971_v0 }
  0x8b   : > { %651 = vmatmul.mubr.f32.vlgmr.msra.gmra.mrb[0].mxu0 %v294_v47  ;;  %735 = vmatpush3.bf16.msra.mxu1 %v734_v50 }
 0x15e   : > { %v367_v52 = vpop.f32.mrb[0].mxu0 }
 0x15f   : > { %v368_v53 = vadd.f32 %v579_v51, %v367_v52  ;;  %v652_v54 = vpop.f32.mrb[1].mxu0 }
 0x161   : > { %v371_v55 = vmax.f32 %v368_v53, 0.0 }
 0x163   : > { %686 = vmatmul.mubr.f32.vlgmr.msra.gmra.mrb[0].mxu1 %v371_v55 }
 0x236   : > { %v455_v57 = vpop.f32.mrb[0].mxu1 }
 0x237   : > { %v459_v58 = vadd.f32 %v578_v56, %v455_v57  ;;  %v687_v59 = vpop.f32.mrb[1].mxu1 }
 0x239   : > { %462 = vst [vmem:[%s268_s28] sm:$0xff] %v459_v58 }
 0x23a   : > { %907 = shalt.err (!%p904_p2)
}
 0x23b   : > { %s908_s12 = scalar_lea.hbm %s1219_s15, 128  ;;  %s912_s26 = scalar_lea.hbm %s1268_s5, 256 }
 0x23c   : > { %p909_p13 = scmp.ne.s32.totalorder %s1219_s15, %s908_s12  ;;  %p913_p4 = scmp.lt.u32.totalorder %s1219_s15, %s1268_s5 }
 0x23d   : > { %p914_p5 = scmp.lt.u32.totalorder %s912_s26, %s908_s12  ;;  %p916_p11 = scmp.lt.u32.totalorder %s908_s12, %s1219_s15 }
 0x23e   : > { %p910_p6 = pnand %p909_p13, %p1282_p0 }
 0x23f   : > { %p915_p8 = por %p914_p5, %p913_p4 }
 0x240   : > { %p911_p10 = pneg %p910_p6 }
 0x241   : > { %p917_p1 = por %p916_p11, %p915_p8 }
 0x243   : > { %p918_p3 = pnand %p917_p1, %p911_p10 }
 0x245   : > { %921 = shalt.err (!%p918_p3)
}
 0x246   : > { %746 = dma.vmem_to_hbm [thread:$0]  (%p1282_p0), %s1221_s7, 128, %s1219_s15, %s464_s16  }
 0x247 PF: > { %s489_s11 = sand.u32 1, %s952_s18   ;;  %p1283_p7 = scmp.ne.s32.totalorder %s1273_s25, 0 }
 0x248   : > { %p1284_p9 = scmp.ge.s32.totalorder %s964_s21, 2  ;;  %s490_s28 = scalar_lea.sflag [#allocation5], %s489_s11 }
 0x24a   : > { %p760_p12 = pnand %p1284_p9, %p1283_p7 }
 0x24c   : > { %947 = dma.done.wait (!%p760_p12), %s490_s28, 128  }
 0x24d   : > { %949 = vsyncadd (!%p760_p12), %s490_s28, 4294967168  ;;  %p19_p2 = scmp.ge.s32.totalorder %s1115_s14, 4   ;;  %s1285_s18 = smov %s956_s19 }
 0x24e   : > { %s1286_s19 = smov %s960_s20  ;;  %s1287_s20 = smov %s1131_s27 }
 0x24f   : > { %s1288_s21 = smov %s1115_s14  ;;  %21 = sbr.rel (!%p19_p2) target bundleno = 6 (0x6), region = 93 }
 0x256   :  { %495 = vsyncpa [#allocation4], 1 }
 0x257   :  { %497 = vsyncpa [#allocation4 + $0x1], 1 }
 0x258   :  { %498 = vsyncpa [#allocation7], 1 }
 0x259   :  { %499 = vsyncpa [#allocation5], 1 }
 0x25a   :  { %501 = vsyncpa [#allocation5 + $0x1], 1 }

</bundles_post_ra>
